<compile_context>
chip_gen: v7x
topology: tpu7x:2x2x1
jax: 0.10.0
libtpu: 0.0.40
codegen_flags: <defaults>
</compile_context>

<pallas_src>
import jax
import jax.numpy as jnp
from jax.experimental import pallas as pl
from jax.experimental.pallas import tpu as pltpu


def _round_up(n, m):
    return ((n + m - 1) // m) * m


def _vmem_capacity_bytes():
    try:
        return int(pltpu.get_tpu_info().vmem_capacity_bytes)
    except Exception:
        return 64 * 1024 * 1024  # conservative fallback: v7x per-TensorCore VMEM


def _sdcca_kernel(x_ref, y_ref,
                  fw1_ref, fb1_ref, gw1_ref, gb1_ref,
                  fw2_ref, gw2_ref, b2_ref,
                  o_ref):
    """Fused (gated-linear -> ReLU -> linear) for both SDCCA branches.

    The eval-mode gate is pre-folded into W1 (per-feature scale commutes), so
    each branch is two bf16 MXU matmuls with f32 accumulation.  Both branches
    write one lane-dense bf16 slab: fx in cols [0, out_dim), gy in cols
    [out_dim, 2*out_dim) -- the packing lives in the zero-padded W2/b2 layout,
    so the kernel does plain adds and one unmasked full-tile store.
    """
    hf = jnp.dot(x_ref[...].astype(fw1_ref.dtype), fw1_ref[...],
                 preferred_element_type=jnp.float32) + fb1_ref[...]
    hg = jnp.dot(y_ref[...].astype(gw1_ref.dtype), gw1_ref[...],
                 preferred_element_type=jnp.float32) + gb1_ref[...]
    hf = jnp.maximum(hf, 0.0).astype(fw2_ref.dtype)      # ReLU -> bf16 into MXU
    hg = jnp.maximum(hg, 0.0).astype(gw2_ref.dtype)
    out = (jnp.dot(hf, fw2_ref[...], preferred_element_type=jnp.float32)
           + jnp.dot(hg, gw2_ref[...], preferred_element_type=jnp.float32)
           + b2_ref[...])
    o_ref[...] = out.astype(o_ref.dtype)


def _fixed_spec(shape, index_map):
    # Resident (constant-index) operands: request single buffering so they are
    # not pointlessly double-buffered by the pipeline.
    try:
        return pl.BlockSpec(shape, index_map, pipeline_mode=pl.Buffered(1))
    except (AttributeError, TypeError):   # older jax: fall back to default
        return pl.BlockSpec(shape, index_map)


def sdcca_forward(X, Y,
                  f_w1, f_b1, g_w1, g_b1,
                  f_w2, g_w2, b2, out_dim, *, max_tile=1024):
    """Single fused pallas_call for both gated MLPs, batch-tiled grid."""
    B, Dx = X.shape
    By, Dy = Y.shape
    assert B == By, "SDCCA expects paired samples (same batch for X and Y)"
    Hf = f_w1.shape[1]
    Hg = g_w1.shape[1]
    OW = f_w2.shape[1]
    assert g_w2.shape[1] == OW and b2.shape[1] == OW

    wsz = f_w1.dtype.itemsize

    # --- batch tile -------------------------------------------------------
    # At least 2 grid steps when B allows it, so ("parallel",) can shard the
    # batch across v7x's two TensorCores; otherwise a single full-batch tile.
    if B >= 16:
        TB = min(max_tile, _round_up(pl.cdiv(B, 2), 8))
    else:
        TB = B

    # --- VMEM accounting ----------------------------------------------------
    def weight_vmem():
        # single-buffered resident weights; (1,N) bias rows pad to 8 sublanes
        return ((Dx * Hf + Dy * Hg + (Hf + Hg) * OW) * wsz
                + 8 * (Hf + Hg + OW) * 4)

    def tile_vmem(tb):
        io = (2 * tb * (_round_up(Dx, 128) + _round_up(Dy, 128)) * X.dtype.itemsize
              + 2 * tb * OW * 2)                               # X/Y/out, 2-deep
        inter = tb * (Hf + Hg) * (4 + 2) + tb * OW * 4         # hidden f32 + bf16, out f32
        return io + inter

    cap = _vmem_capacity_bytes()
    budget = int(0.70 * cap)
    while TB >= 16 and weight_vmem() + tile_vmem(TB) > budget:
        TB = _round_up(TB // 2, 8)
    # TODO(synk): if weight_vmem() alone ever nears the budget (huge hidden on
    # v7x's 64 MiB), add an "arbitrary" grid axis over the hidden dim with a
    # pl.when-initialized f32 accumulator instead of keeping all weights resident.

    grid = (pl.cdiv(B, TB),)
    row = lambda i: (i, 0)        # batch-tiled operands / output
    fix = lambda i: (0, 0)        # resident weights / biases

    in_specs = [
        pl.BlockSpec((TB, Dx), row),
        pl.BlockSpec((TB, Dy), row),
        _fixed_spec((Dx, Hf), fix), _fixed_spec((1, Hf), fix),
        _fixed_spec((Dy, Hg), fix), _fixed_spec((1, Hg), fix),
        _fixed_spec((Hf, OW), fix), _fixed_spec((Hg, OW), fix),
        _fixed_spec((1, OW), fix),
    ]
    out_specs = pl.BlockSpec((TB, OW), row)

    vmem_limit = min(budget,
                     max(32 * 1024 * 1024,
                         int(1.25 * (weight_vmem() + tile_vmem(TB)))))

    flops = 2 * B * (Dx * Hf + Dy * Hg + (Hf + Hg) * OW)
    bytes_accessed = (X.size * X.dtype.itemsize + Y.size * Y.dtype.itemsize
                      + (f_w1.size + g_w1.size + f_w2.size + g_w2.size) * wsz
                      + (f_b1.size + g_b1.size + b2.size) * 4
                      + B * OW * 2)

    out = pl.pallas_call(
        _sdcca_kernel,
        out_shape=jax.ShapeDtypeStruct((B, OW), jnp.bfloat16),
        grid=grid,
        in_specs=in_specs,
        out_specs=out_specs,
        compiler_params=pltpu.CompilerParams(
            dimension_semantics=("parallel",),
            vmem_limit_bytes=vmem_limit),
        cost_estimate=pl.CostEstimate(
            flops=flops, transcendentals=0, bytes_accessed=bytes_accessed),
    )(X, Y, f_w1, f_b1, g_w1, g_b1, f_w2, g_w2, b2)

    fx = out[:, :out_dim].astype(jnp.float32)
    gy = out[:, out_dim:2 * out_dim].astype(jnp.float32)
    return fx, gy


class SDCCAPallas:
    """JAX/Pallas port of SDCCA (eval mode): (gated_f(X), gated_g(Y))."""

    def __init__(self, x_size, y_size, hidden, out_dim,
                 sigmax, lamx, sigmay, lamy, key,
                 weight_dtype=jnp.bfloat16):
        k1, k2, k3, k4 = jax.random.split(key, 4)
        f32 = jnp.float32
        self.out_dim = out_dim
        self.weight_dtype = weight_dtype
        Hp = _round_up(hidden, 128)            # lane-dense padded hidden width
        OW = _round_up(2 * out_dim, 128)       # single packed output slab width
        self.hpad, self.out_w = Hp, OW
        self.sigmax, self.lamx = sigmax, lamx
        self.sigmay, self.lamy = sigmay, lamy
        # StochasticGates parameters (mu init = 0.5, as in the STG code).
        self.mu_x = 0.5 * jnp.ones((1, x_size), f32)
        self.mu_y = 0.5 * jnp.ones((1, y_size), f32)
        # f : x_size -> hidden -> out_dim  (hidden zero-padded to Hp; W2 columns
        # occupy [0, out_dim) of the OW-wide packed slab).  W1 kept in f32 so
        # the eval-mode gate can be folded per call before the bf16 cast.
        f_w1 = 0.1 * jax.random.normal(k1, (x_size, hidden), f32)
        self.f_w1 = jnp.pad(f_w1, ((0, 0), (0, Hp - hidden)))
        self.f_b1 = jnp.zeros((1, Hp), f32)
        f_w2 = 0.1 * jax.random.normal(k2, (hidden, out_dim), f32)
        self.f_w2 = jnp.pad(f_w2, ((0, Hp - hidden),
                                   (0, OW - out_dim))).astype(weight_dtype)
        # g : y_size -> hidden -> out_dim  (W2 columns occupy [out_dim, 2*out_dim)).
        g_w1 = 0.1 * jax.random.normal(k3, (y_size, hidden), f32)
        self.g_w1 = jnp.pad(g_w1, ((0, 0), (0, Hp - hidden)))
        self.g_b1 = jnp.zeros((1, Hp), f32)
        g_w2 = 0.1 * jax.random.normal(k4, (hidden, out_dim), f32)
        self.g_w2 = jnp.pad(g_w2, ((0, Hp - hidden),
                                   (out_dim, OW - 2 * out_dim))).astype(weight_dtype)
        # Joint second-layer bias slab (f bias in [0,out_dim), g bias in [out_dim,2*out_dim)).
        self.b2 = jnp.zeros((1, OW), f32)

    def forward(self, X, Y):
        # Eval-mode stochastic gate clamp(mu,0,1) folded into W1 (per-feature
        # scale commutes), so the kernel never does the TB x D gate multiply.
        # TODO(synk): training-mode gate noise (mu + sigma*randn) not implemented.
        fw1 = (jnp.clip(self.mu_x, 0.0, 1.0).reshape(-1, 1)
               * self.f_w1).astype(self.weight_dtype)
        gw1 = (jnp.clip(self.mu_y, 0.0, 1.0).reshape(-1, 1)
               * self.g_w1).astype(self.weight_dtype)
        return sdcca_forward(X, Y, fw1, self.f_b1, gw1, self.g_b1,
                             self.f_w2, self.g_w2, self.b2, self.out_dim)

    def get_gates(self):
        return (jnp.clip(self.mu_x, 0.0, 1.0).reshape(-1),
                jnp.clip(self.mu_y, 0.0, 1.0).reshape(-1))

    def get_reg(self):
        def reg(mu, sigma):
            return 0.5 - 0.5 * jax.scipy.special.erf(-mu / (sigma * jnp.sqrt(2.0)))
        return (reg(self.mu_x, self.sigmax).mean()
                + reg(self.mu_y, self.sigmay).mean())


def _reference(X, Y, m):
    """Pure-JAX reference mirroring the kernel's bf16 rounding points."""
    f32 = jnp.float32
    wd = m.weight_dtype

    def one(x, mu, w1, b1, w2, col0):
        gate = jnp.clip(mu, 0.0, 1.0)
        w1g = (gate.reshape(-1, 1) * w1).astype(wd).astype(f32)
        h = x.astype(wd).astype(f32) @ w1g + b1
        h = jnp.maximum(h, 0.0).astype(wd).astype(f32)
        out = h @ w2.astype(f32) + m.b2
        out = out.astype(jnp.bfloat16).astype(f32)     # kernel output slab dtype
        return out[:, col0:col0 + m.out_dim]

    fx = one(X, m.mu_x, m.f_w1, m.f_b1, m.f_w2, 0)
    gy = one(Y, m.mu_y, m.g_w1, m.g_b1, m.g_w2, m.out_dim)
    return fx, gy


if __name__ == "__main__":
    key = jax.random.PRNGKey(0)
    kx, ky, kp = jax.random.split(key, 3)

    B, X_SIZE, Y_SIZE, HIDDEN, OUT = 8, 32, 16, 32, 8
    X = jax.random.normal(kx, (B, X_SIZE), jnp.float32)
    Y = jax.random.normal(ky, (B, Y_SIZE), jnp.float32)

    model = SDCCAPallas(X_SIZE, Y_SIZE, HIDDEN, OUT,
                        sigmax=0.5, lamx=0.1, sigmay=0.5, lamy=0.1, key=kp)

    fx, gy = model.forward(X, Y)
    jax.block_until_ready((fx, gy))

    fx_ref, gy_ref = _reference(X, Y, model)
    assert fx.shape == (B, OUT) and gy.shape == (B, OUT)
    assert jnp.allclose(fx, fx_ref, atol=1e-2, rtol=1e-2), \
        float(jnp.max(jnp.abs(fx - fx_ref)))
    assert jnp.allclose(gy, gy_ref, atol=1e-2, rtol=1e-2), \
        float(jnp.max(jnp.abs(gy - gy_ref)))

    # Exercise the auxiliary (non-kernel) SDCCA API too.
    gates_x, gates_y = model.get_gates()
    reg = model.get_reg()
    jax.block_until_ready((gates_x, gates_y, reg))

    print("KERNEL_OK")
</pallas_src>

<mosaic_0001>
module attributes {stable_mosaic.version = 11 : i64} {
  func.func @_sdcca_kernel(%arg0: i32, %arg1: memref<8x32xf32, #tpu.memory_space<vmem>>, %arg2: memref<8x16xf32, #tpu.memory_space<vmem>>, %arg3: memref<32x128xbf16, #tpu.memory_space<vmem>>, %arg4: memref<1x128xf32, #tpu.memory_space<vmem>>, %arg5: memref<16x128xbf16, #tpu.memory_space<vmem>>, %arg6: memref<1x128xf32, #tpu.memory_space<vmem>>, %arg7: memref<128x128xbf16, #tpu.memory_space<vmem>>, %arg8: memref<128x128xbf16, #tpu.memory_space<vmem>>, %arg9: memref<1x128xf32, #tpu.memory_space<vmem>>, %arg10: memref<8x128xbf16, #tpu.memory_space<vmem>>) attributes {dimension_semantics = [#tpu.dimension_semantics<parallel>], iteration_bounds = array<i64: 1>, scalar_prefetch = 0 : i64, scratch_operands = 0 : i64, tpu.core_type = #tpu.core_type<tc>, window_params = [{transform_indices = @transform_0, window_bounds = array<i64: 8, 32>}, {transform_indices = @transform_1, window_bounds = array<i64: 8, 16>}, {pipeline_mode = #tpu.pipeline_mode<synchronous>, transform_indices = @transform_2, window_bounds = array<i64: 32, 128>}, {pipeline_mode = #tpu.pipeline_mode<synchronous>, transform_indices = @transform_3, window_bounds = array<i64: 1, 128>}, {pipeline_mode = #tpu.pipeline_mode<synchronous>, transform_indices = @transform_4, window_bounds = array<i64: 16, 128>}, {pipeline_mode = #tpu.pipeline_mode<synchronous>, transform_indices = @transform_5, window_bounds = array<i64: 1, 128>}, {pipeline_mode = #tpu.pipeline_mode<synchronous>, transform_indices = @transform_6, window_bounds = array<i64: 128, 128>}, {pipeline_mode = #tpu.pipeline_mode<synchronous>, transform_indices = @transform_7, window_bounds = array<i64: 128, 128>}, {pipeline_mode = #tpu.pipeline_mode<synchronous>, transform_indices = @transform_8, window_bounds = array<i64: 1, 128>}, {transform_indices = @transform_9, window_bounds = array<i64: 8, 128>}]} {
    %c0 = arith.constant 0 : index
    %c0_0 = arith.constant 0 : index
    %0 = vector.load %arg1[%c0, %c0_0] : memref<8x32xf32, #tpu.memory_space<vmem>>, vector<8x32xf32>
    %1 = arith.truncf %0 : vector<8x32xf32> to vector<8x32xbf16>
    %c0_1 = arith.constant 0 : index
    %c0_2 = arith.constant 0 : index
    %2 = vector.load %arg3[%c0_1, %c0_2] : memref<32x128xbf16, #tpu.memory_space<vmem>>, vector<32x128xbf16>
    %cst = arith.constant dense<0.000000e+00> : vector<8x128xf32>
    %3 = tpu.matmul %1, %2, %cst {dimension_numbers = #tpu.dot_dimension_numbers<[1], [0], [0], [1], [0, 0, 1, 1], [], []>} : vector<8x32xbf16>, vector<32x128xbf16>, vector<8x128xf32> -> vector<8x128xf32>
    %c0_3 = arith.constant 0 : index
    %c0_4 = arith.constant 0 : index
    %4 = vector.load %arg4[%c0_3, %c0_4] : memref<1x128xf32, #tpu.memory_space<vmem>>, vector<1x128xf32>
    %5 = vector.broadcast %4 : vector<1x128xf32> to vector<8x128xf32>
    %6 = arith.addf %3, %5 : vector<8x128xf32>
    %c0_5 = arith.constant 0 : index
    %c0_6 = arith.constant 0 : index
    %7 = vector.load %arg2[%c0_5, %c0_6] : memref<8x16xf32, #tpu.memory_space<vmem>>, vector<8x16xf32>
    %8 = arith.truncf %7 : vector<8x16xf32> to vector<8x16xbf16>
    %c0_7 = arith.constant 0 : index
    %c0_8 = arith.constant 0 : index
    %9 = vector.load %arg5[%c0_7, %c0_8] : memref<16x128xbf16, #tpu.memory_space<vmem>>, vector<16x128xbf16>
    %cst_9 = arith.constant dense<0.000000e+00> : vector<8x128xf32>
    %10 = tpu.matmul %8, %9, %cst_9 {dimension_numbers = #tpu.dot_dimension_numbers<[1], [0], [0], [1], [0, 0, 1, 1], [], []>} : vector<8x16xbf16>, vector<16x128xbf16>, vector<8x128xf32> -> vector<8x128xf32>
    %c0_10 = arith.constant 0 : index
    %c0_11 = arith.constant 0 : index
    %11 = vector.load %arg6[%c0_10, %c0_11] : memref<1x128xf32, #tpu.memory_space<vmem>>, vector<1x128xf32>
    %12 = vector.broadcast %11 : vector<1x128xf32> to vector<8x128xf32>
    %13 = arith.addf %10, %12 : vector<8x128xf32>
    %cst_12 = arith.constant 0.000000e+00 : f32
    %14 = vector.broadcast %cst_12 : f32 to vector<8x128xf32>
    %15 = arith.maximumf %6, %14 : vector<8x128xf32>
    %16 = arith.truncf %15 : vector<8x128xf32> to vector<8x128xbf16>
    %cst_13 = arith.constant 0.000000e+00 : f32
    %17 = vector.broadcast %cst_13 : f32 to vector<8x128xf32>
    %18 = arith.maximumf %13, %17 : vector<8x128xf32>
    %19 = arith.truncf %18 : vector<8x128xf32> to vector<8x128xbf16>
    %c0_14 = arith.constant 0 : index
    %c0_15 = arith.constant 0 : index
    %20 = vector.load %arg7[%c0_14, %c0_15] : memref<128x128xbf16, #tpu.memory_space<vmem>>, vector<128x128xbf16>
    %cst_16 = arith.constant dense<0.000000e+00> : vector<8x128xf32>
    %21 = tpu.matmul %16, %20, %cst_16 {dimension_numbers = #tpu.dot_dimension_numbers<[1], [0], [0], [1], [0, 0, 1, 1], [], []>} : vector<8x128xbf16>, vector<128x128xbf16>, vector<8x128xf32> -> vector<8x128xf32>
    %c0_17 = arith.constant 0 : index
    %c0_18 = arith.constant 0 : index
    %22 = vector.load %arg8[%c0_17, %c0_18] : memref<128x128xbf16, #tpu.memory_space<vmem>>, vector<128x128xbf16>
    %cst_19 = arith.constant dense<0.000000e+00> : vector<8x128xf32>
    %23 = tpu.matmul %19, %22, %cst_19 {dimension_numbers = #tpu.dot_dimension_numbers<[1], [0], [0], [1], [0, 0, 1, 1], [], []>} : vector<8x128xbf16>, vector<128x128xbf16>, vector<8x128xf32> -> vector<8x128xf32>
    %24 = arith.addf %21, %23 : vector<8x128xf32>
    %c0_20 = arith.constant 0 : index
    %c0_21 = arith.constant 0 : index
    %25 = vector.load %arg9[%c0_20, %c0_21] : memref<1x128xf32, #tpu.memory_space<vmem>>, vector<1x128xf32>
    %26 = vector.broadcast %25 : vector<1x128xf32> to vector<8x128xf32>
    %27 = arith.addf %24, %26 : vector<8x128xf32>
    %28 = arith.truncf %27 : vector<8x128xf32> to vector<8x128xbf16>
    %c0_22 = arith.constant 0 : index
    %c0_23 = arith.constant 0 : index
    %29 = vector.load %arg10[%c0_22, %c0_23] : memref<8x128xbf16, #tpu.memory_space<vmem>>, vector<8x128xbf16>
    tpu.vector_store %arg10[%c0_22, %c0_23], %28 {strides = array<i32>} : memref<8x128xbf16, #tpu.memory_space<vmem>>, vector<8x128xbf16>,
    return
  }
  func.func @transform_0(%arg0: i32) -> (i32, i32) {
    %c0_i32 = arith.constant 0 : i32
    %c0_i32_0 = arith.constant 0 : i32
    return %arg0, %c0_i32 : i32, i32
  }
  func.func @transform_1(%arg0: i32) -> (i32, i32) {
    %c0_i32 = arith.constant 0 : i32
    %c0_i32_0 = arith.constant 0 : i32
    return %arg0, %c0_i32 : i32, i32
  }
  func.func @transform_2(%arg0: i32) -> (i32, i32) {
    %c0_i32 = arith.constant 0 : i32
    %c0_i32_0 = arith.constant 0 : i32
    %c0_i32_1 = arith.constant 0 : i32
    return %c0_i32, %c0_i32_0 : i32, i32
  }
  func.func @transform_3(%arg0: i32) -> (i32, i32) {
    %c0_i32 = arith.constant 0 : i32
    %c0_i32_0 = arith.constant 0 : i32
    %c0_i32_1 = arith.constant 0 : i32
    return %c0_i32, %c0_i32_0 : i32, i32
  }
  func.func @transform_4(%arg0: i32) -> (i32, i32) {
    %c0_i32 = arith.constant 0 : i32
    %c0_i32_0 = arith.constant 0 : i32
    %c0_i32_1 = arith.constant 0 : i32
    return %c0_i32, %c0_i32_0 : i32, i32
  }
  func.func @transform_5(%arg0: i32) -> (i32, i32) {
    %c0_i32 = arith.constant 0 : i32
    %c0_i32_0 = arith.constant 0 : i32
    %c0_i32_1 = arith.constant 0 : i32
    return %c0_i32, %c0_i32_0 : i32, i32
  }
  func.func @transform_6(%arg0: i32) -> (i32, i32) {
    %c0_i32 = arith.constant 0 : i32
    %c0_i32_0 = arith.constant 0 : i32
    %c0_i32_1 = arith.constant 0 : i32
    return %c0_i32, %c0_i32_0 : i32, i32
  }
  func.func @transform_7(%arg0: i32) -> (i32, i32) {
    %c0_i32 = arith.constant 0 : i32
    %c0_i32_0 = arith.constant 0 : i32
    %c0_i32_1 = arith.constant 0 : i32
    return %c0_i32, %c0_i32_0 : i32, i32
  }
  func.func @transform_8(%arg0: i32) -> (i32, i32) {
    %c0_i32 = arith.constant 0 : i32
    %c0_i32_0 = arith.constant 0 : i32
    %c0_i32_1 = arith.constant 0 : i32
    return %c0_i32, %c0_i32_0 : i32, i32
  }
  func.func @transform_9(%arg0: i32) -> (i32, i32) {
    %c0_i32 = arith.constant 0 : i32
    %c0_i32_0 = arith.constant 0 : i32
    return %arg0, %c0_i32 : i32, i32
  }
}

</mosaic_0001>

<bundles_post_ra>
// kernel: tpu_custom_call.1
= control target key start
LH: loop header
LB: loop body
LE: loop exit
PB: predicated region body
PF: predicated region fallthrough
CT: control target
= control target key end

     0   :  { %14 = vsyncpa [#allocation3], 0  ;;  %s917_s0 = inlined_call_operand.hbm [shape: f32[8,32], index: 0, kind: input, shape index: {}]   ;;  %s918_s1 = inlined_call_operand.hbm [shape: f32[8,16], index: 1, kind: input, shape index: {}]   ;;  %s919_s2 = inlined_call_operand.hbm [shape: bf16[32,128], index: 2, kind: input, shape index: {}]   ;;  %s920_s3 = inlined_call_operand.vmem [shape: f32[1,128], index: 3, kind: input, shape index: {}]   ;;  %s921_s4 = inlined_call_operand.vmem [shape: bf16[16,128], index: 4, kind: input, shape index: {}]   ;;  %s922_s5 = inlined_call_operand.vmem [shape: f32[1,128], index: 5, kind: input, shape index: {}]   ;;  %s923_s6 = inlined_call_operand.hbm [shape: bf16[128,128], index: 6, kind: input, shape index: {}]   ;;  %s924_s7 = inlined_call_operand.hbm [shape: bf16[128,128], index: 7, kind: input, shape index: {}]   ;;  %s925_s8 = inlined_call_operand.vmem [shape: f32[1,128], index: 8, kind: input, shape index: {}]   ;;  %s926_s9 = inlined_call_operand.hbm [shape: bf16[8,128], index: 9, kind: output, shape index: {}]  }
   0x1   :  { %15 = vsyncpa [#allocation6], 0 }
   0x2   :  { %16 = vsyncpa [#allocation9], 0 }
   0x3   :  { %17 = vsyncpa [#allocation4], 0  ;;  %s737_s30 = smov [#allocation5]   ;;  %s597_s13 = scalar_lea.hbm %s918_s1, 128 }
   0x4   :  { %s34_s10 = sshll.u32 %s737_s30, 4  ;;  %p598_p0 = scmp.ne.s32.totalorder %s918_s1, %s597_s13  ;;  %s35_s10 = int_to_ptr.vmem [resolvable:$true] %s34_s10 }
   0x5   :  { %p601_p1 = scmp.lt.u32.totalorder %s597_s13, %s918_s1 }
   0x7   :  { %p603_p2 = pnand %p601_p1, %p598_p0 }
   0x9   :  { %606 = shalt.err (!%p603_p2)
}
   0xa   :  { %s607_s18 = scalar_lea.vmem %s35_s10, 128  ;;  %p612_p4 = scmp.lt.s32.totalorder %s35_s10, %s35_s10 }
   0xb   :  { %p608_p3 = scmp.ne.s32.totalorder %s35_s10, %s607_s18  ;;  %p613_p5 = scmp.lt.s32.totalorder %s607_s18, %s607_s18 }
   0xd   :  { %p614_p6 = por %p613_p5, %p612_p4 }
   0xf   :  { %p615_p7 = pnand %p614_p6, %p608_p3 }
  0x11   :  { %618 = shalt.err (!%p615_p7)
}
  0x12   :  { %37 = dma.hbm_to_vmem [thread:$0]  %s918_s1, 128, %s35_s10, [#allocation6]  }
  0x13   :  { %s738_s21 = smov [#allocation8]   ;;  %s739_s23 = smov [#allocation2]  }
  0x14   :  { %s61_s22 = sshll.u32 %s738_s21, 4  ;;  %s24_s24 = sshll.u32 %s739_s23, 4  ;;  %s62_s22 = int_to_ptr.vmem [resolvable:$true] %s61_s22  ;;  %s25_s24 = int_to_ptr.vmem [resolvable:$true] %s24_s24 }
  0x15   :  { %s619_s27 = scalar_lea.hbm %s923_s6, 1024 }
  0x16   :  { %p620_p8 = scmp.ne.s32.totalorder %s923_s6, %s619_s27  ;;  %p623_p9 = scmp.lt.u32.totalorder %s619_s27, %s923_s6 }
  0x18   :  { %p625_p10 = pnand %p623_p9, %p620_p8 }
  0x1a   :  { %628 = shalt.err (!%p625_p10)
}
  0x1b   :  { %s629_s1 = scalar_lea.vmem %s62_s22, 1024  ;;  %p634_p12 = scmp.lt.s32.totalorder %s62_s22, %s62_s22 }
  0x1c   :  { %p630_p11 = scmp.ne.s32.totalorder %s62_s22, %s629_s1  ;;  %p635_p13 = scmp.lt.s32.totalorder %s629_s1, %s629_s1 }
  0x1e   :  { %p636_p0 = por %p635_p13, %p634_p12 }
  0x20   :  { %p637_p1 = pnand %p636_p0, %p630_p11 }
  0x22   :  { %640 = shalt.err (!%p637_p1)
}
  0x23   :  { %s740_s10 = smov 64   ;;  %s741_s12 = smov 4  }
  0x24   :  { %67 = dma.hbm_to_vmem [thread:$0]  %s923_s6, 1024, %s62_s22, [#allocation9], %s740_s10, %s740_s10, %s741_s12  }
  0x25   :  { %s641_s17 = scalar_lea.hbm %s917_s0, 128 }
  0x26   :  { %p642_p2 = scmp.ne.s32.totalorder %s917_s0, %s641_s17  ;;  %p645_p3 = scmp.lt.u32.totalorder %s641_s17, %s917_s0 }
  0x28   :  { %p647_p4 = pnand %p645_p3, %p642_p2 }
  0x2a   :  { %650 = shalt.err (!%p647_p4)
}
  0x2b   :  { %s651_s23 = scalar_lea.vmem %s25_s24, 128  ;;  %p656_p6 = scmp.lt.s32.totalorder %s25_s24, %s25_s24 }
  0x2c   :  { %p652_p5 = scmp.ne.s32.totalorder %s25_s24, %s651_s23  ;;  %p657_p7 = scmp.lt.s32.totalorder %s651_s23, %s651_s23 }
  0x2e   :  { %p658_p8 = por %p657_p7, %p656_p6 }
  0x30   :  { %p659_p9 = pnand %p658_p8, %p652_p5 }
  0x32   :  { %662 = shalt.err (!%p659_p9)
}
  0x33   :  { %27 = dma.hbm_to_vmem [thread:$0]  %s917_s0, 128, %s25_s24, [#allocation3]  }
  0x34   :  { %s742_s25 = smov [#allocation7]   ;;  %s743_s27 = smov [#allocation10]  }
  0x35   :  { %s43_s26 = sshll.u32 %s742_s25, 4  ;;  %s73_s28 = sshll.u32 %s743_s27, 4  ;;  %s44_s26 = int_to_ptr.vmem [resolvable:$true] %s43_s26  ;;  %s74_s28 = int_to_ptr.vmem [resolvable:$true] %s73_s28 }
  0x36   :  { %s663_s11 = scalar_lea.hbm %s919_s2, 256 }
  0x37   :  { %p664_p10 = scmp.ne.s32.totalorder %s919_s2, %s663_s11  ;;  %p667_p11 = scmp.lt.u32.totalorder %s663_s11, %s919_s2 }
  0x39   :  { %p669_p12 = pnand %p667_p11, %p664_p10 }
  0x3b   :  { %672 = shalt.err (!%p669_p12)
}
  0x3c   :  { %s673_s0 = scalar_lea.vmem %s44_s26, 256  ;;  %p678_p0 = scmp.lt.s32.totalorder %s44_s26, %s44_s26 }
  0x3d   :  { %p674_p13 = scmp.ne.s32.totalorder %s44_s26, %s673_s0  ;;  %p679_p1 = scmp.lt.s32.totalorder %s673_s0, %s673_s0 }
  0x3f   :  { %p680_p2 = por %p679_p1, %p678_p0 }
  0x41   :  { %p681_p3 = pnand %p680_p2, %p674_p13 }
  0x43   :  { %684 = shalt.err (!%p681_p3)
}
  0x44   :  { %49 = dma.hbm_to_vmem [thread:$0]  %s919_s2, 256, %s44_s26, [#allocation6], %s740_s10, %s740_s10, %s741_s12  }
  0x45   :  { %s685_s19 = scalar_lea.hbm %s924_s7, 1024 }
  0x46   :  { %p686_p4 = scmp.ne.s32.totalorder %s924_s7, %s685_s19  ;;  %p689_p5 = scmp.lt.u32.totalorder %s685_s19, %s924_s7 }
  0x48   :  { %p691_p6 = pnand %p689_p5, %p686_p4 }
  0x4a   :  { %694 = shalt.err (!%p691_p6)
}
  0x4b   :  { %s695_s22 = scalar_lea.vmem %s74_s28, 1024  ;;  %p700_p8 = scmp.lt.s32.totalorder %s74_s28, %s74_s28 }
  0x4c   :  { %p696_p7 = scmp.ne.s32.totalorder %s74_s28, %s695_s22  ;;  %p701_p9 = scmp.lt.s32.totalorder %s695_s22, %s695_s22 }
  0x4e   :  { %p702_p10 = por %p701_p9, %p700_p8 }
  0x50   :  { %p703_p11 = pnand %p702_p10, %p696_p7 }
  0x52   :  { %706 = shalt.err (!%p703_p11)
}
  0x53   :  { %79 = dma.hbm_to_vmem [thread:$0]  %s924_s7, 1024, %s74_s28, [#allocation9], %s740_s10, %s740_s10, %s741_s12  }
  0x54   :  { %729 = dma.done.wait [#allocation3], 128  }
  0x55   :  { %730 = vsyncadd [#allocation3], 4294967168 }
  0x56   :  { %731 = dma.done.wait [#allocation6], 384  }
  0x57   :  { %732 = vsyncadd [#allocation6], 4294966912 }
  0x58   :  { %733 = dma.done.wait [#allocation9], 2048  }
  0x59   :  { %734 = vsyncadd [#allocation9], 4294965248  ;;  %v744_v0 = vmov 0.0   ;;  %vm745_vm0 = vmmov 0   ;;  %v578_v1 = vld [vmem:[#allocation7] sm:$0xff]   ;;  %v579_v2 = vld [vmem:[%s921_s4] sm:$0xff]  }
  0x5a   :  { %514 = vmatprep.subr.bf16.mxu0 %v744_v0  ;;  %522 = vmatprep.subr.bf16.mxu1 %v744_v0  ;;  %v580_v3 = vld [vmem:[#allocation7 + $0x8] sm:$0xff]   ;;  %v167_v4 = vld [vmem:[#allocation5] sm:$0xff]  ;;  %vm184_vm1 = vcmask 130048   ;;  %v98_v5 = vld [vmem:[#allocation2] sm:$0xff]  ;;  %vm123_vm2 = vcmask 261120   ;;  %s746_s28 = smov [#allocation11]  }
  0x5b   :  { %524 = vmatprep.mubr.msk.bf16.mxu1 %vm745_vm0, %v744_v0  ;;  %518 = vmatprep.mubr.msk.bf16.mxu0 %vm745_vm0, %v744_v0  ;;  %v168_v6 = vpack.c.bf16 %v167_v4, %v167_v4  ;;  %v581_v7 = vld [vmem:[#allocation10] sm:$0xff]   ;;  %v99_v8 = vpack.c.bf16 %v98_v5, %v98_v5  ;;  %v583_v10 = vld [vmem:[#allocation10 + $0x8] sm:$0xff]   ;;  %v585_v12 = vld [vmem:[#allocation10 + $0x10] sm:$0xff]   ;;  %s456_s29 = sshll.u32 %s746_s28, 4  ;;  %s457_s29 = int_to_ptr.vmem [resolvable:$true] %s456_s29 }
  0x5c   :  { %515 = vmatpush3.bf16.msra.mxu0 %v578_v1  ;;  %523 = vmatpush3.bf16.msra.mxu1 %v579_v2  ;;  %v582_v9 = vld [vmem:[#allocation8] sm:$0xff]   ;;  %v584_v11 = vld [vmem:[#allocation8 + $0x8] sm:$0xff]   ;;  %v586_v13 = vld [vmem:[#allocation8 + $0x10] sm:$0xff]   ;;  %s707_s30 = scalar_lea.vmem %s457_s29, 64  ;;  %p712_p13 = scmp.lt.s32.totalorder %s457_s29, %s457_s29 }
  0x5d   :  { %516 = vmatprep.subr.bf16.mxu0 %v744_v0  ;;  %528 = vmatprep.subr.bf16.mxu1 %v744_v0  ;;  %v587_v14 = vld [vmem:[#allocation10 + $0x18] sm:$0xff]   ;;  %v589_v16 = vld [vmem:[#allocation10 + $0x20] sm:$0xff]   ;;  %v591_v18 = vld [vmem:[#allocation10 + $0x28] sm:$0xff]   ;;  %p708_p12 = scmp.ne.s32.totalorder %s457_s29, %s707_s30  ;;  %p713_p0 = scmp.lt.s32.totalorder %s707_s30, %s707_s30 }
  0x5e   :  { %v588_v15 = vld [vmem:[#allocation8 + $0x18] sm:$0xff]   ;;  %v590_v17 = vld [vmem:[#allocation8 + $0x20] sm:$0xff]   ;;  %v592_v19 = vld [vmem:[#allocation8 + $0x28] sm:$0xff]  }
  0x5f   :  { %525 = vmatmul.mubr.msk.bf16.vlgmr.msra.gmra.mrb[0].mxu1 %vm184_vm1, %v168_v6  ;;  %v593_v20 = vld [vmem:[#allocation10 + $0x30] sm:$0xff]   ;;  %v595_v22 = vld [vmem:[#allocation10 + $0x38] sm:$0xff]   ;;  %v471_v24 = vld [vmem:[%s922_s5] ss:$0 sm:$0xff]  ;;  %p714_p1 = por %p713_p0, %p712_p13 }
  0x60   :  { %517 = vmatpush3.bf16.msra.mxu0 %v580_v3  ;;  %529 = vmatpush3.bf16.msra.mxu1 %v581_v7  ;;  %v594_v21 = vld [vmem:[#allocation8 + $0x30] sm:$0xff]   ;;  %v596_v23 = vld [vmem:[#allocation8 + $0x38] sm:$0xff]   ;;  %v467_v28 = vld [vmem:[%s920_s3] ss:$0 sm:$0xff] }
  0x61   :  { %548 = vmatprep.subr.bf16.mxu0 %v744_v0  ;;  %530 = vmatprep.subr.bf16.mxu1 %v744_v0  ;;  %v490_v45 = vld [vmem:[%s925_s8] ss:$0 sm:$0xff]  ;;  %p715_p2 = pnand %p714_p1, %p708_p12 }
  0x62   :  { %544 = vmatprep.mubr.msk.bf16.mxu1 %vm745_vm0, %v744_v0 }
  0x63   :  { %519 = vmatmul.mubr.msk.bf16.vlgmr.msra.gmra.mrb[0].mxu0 %vm123_vm2, %v99_v8 }
  0x64   :  { %549 = vmatpush3.bf16.msra.mxu0 %v582_v9  ;;  %564 = vmatprep.mubr.msk.bf16.mxu0 %vm745_vm0, %v744_v0 }
  0x65   :  { %531 = vmatpush3.bf16.msra.mxu1 %v583_v10  ;;  %550 = vmatprep.subr.bf16.mxu0 %v744_v0 }
  0x66   :  { %532 = vmatprep.subr.bf16.mxu1 %v744_v0 }
  0x68   :  { %551 = vmatpush3.bf16.msra.mxu0 %v584_v11 }
  0x69   :  { %533 = vmatpush3.bf16.msra.mxu1 %v585_v12  ;;  %552 = vmatprep.subr.bf16.mxu0 %v744_v0 }
  0x6a   :  { %534 = vmatprep.subr.bf16.mxu1 %v744_v0 }
  0x6c   :  { %553 = vmatpush3.bf16.msra.mxu0 %v586_v13 }
  0x6d   :  { %535 = vmatpush3.bf16.msra.mxu1 %v587_v14  ;;  %554 = vmatprep.subr.bf16.mxu0 %v744_v0 }
  0x6e   :  { %536 = vmatprep.subr.bf16.mxu1 %v744_v0 }
  0x70   :  { %555 = vmatpush3.bf16.msra.mxu0 %v588_v15 }
  0x71   :  { %537 = vmatpush3.bf16.msra.mxu1 %v589_v16  ;;  %556 = vmatprep.subr.bf16.mxu0 %v744_v0 }
  0x72   :  { %538 = vmatprep.subr.bf16.mxu1 %v744_v0 }
  0x74   :  { %557 = vmatpush3.bf16.msra.mxu0 %v590_v17 }
  0x75   :  { %539 = vmatpush3.bf16.msra.mxu1 %v591_v18  ;;  %558 = vmatprep.subr.bf16.mxu0 %v744_v0 }
  0x76   :  { %540 = vmatprep.subr.bf16.mxu1 %v744_v0 }
  0x78   :  { %559 = vmatpush3.bf16.msra.mxu0 %v592_v19 }
  0x79   :  { %560 = vmatprep.subr.bf16.mxu0 %v744_v0  ;;  %541 = vmatpush3.bf16.msra.mxu1 %v593_v20 }
  0x7a   :  { %542 = vmatprep.subr.bf16.mxu1 %v744_v0 }
  0x7c   :  { %561 = vmatpush3.bf16.msra.mxu0 %v594_v21 }
  0x7d   :  { %543 = vmatpush3.bf16.msra.mxu1 %v595_v22  ;;  %562 = vmatprep.subr.bf16.mxu0 %v744_v0 }
  0x80   :  { %563 = vmatpush3.bf16.msra.mxu0 %v596_v23 }
 0x132   :  { %v222_v25 = vpop.f32.mrb[0].mxu1 }
 0x133   :  { %v223_v26 = vadd.f32 %v471_v24, %v222_v25  ;;  %v526_v27 = vpop.f32.mrb[1].mxu1 }
 0x134   :  { %v225_v29 = vpop.f32.mrb[2].mxu1 }
 0x135   :  { %v230_v30 = vmax.f32 %v223_v26, 0.0  ;;  %v527_v32 = vpop.f32.mrb[3].mxu1 }
 0x136   :  { %v161_v31 = vpop.f32.mrb[0].mxu0 }
 0x137   :  { %v162_v33 = vadd.f32 %v467_v28, %v161_v31  ;;  %v520_v34 = vpop.f32.mrb[1].mxu0  ;;  %v231_v35 = vpack.c.bf16 %v230_v30, %v230_v30 }
 0x138   :  { %v164_v36 = vpop.f32.mrb[2].mxu0 }
 0x139   :  { %v228_v37 = vmax.f32 %v162_v33, 0.0  ;;  %v521_v38 = vpop.f32.mrb[3].mxu0  ;;  %545 = vmatmul.mubr.bf16.vlgmr.msra.gmra.mrb[4].mxu1 %v231_v35 }
 0x13b   :  { %v229_v39 = vpack.c.bf16 %v228_v37, %v228_v37 }
 0x13d   :  { %565 = vmatmul.mubr.bf16.vlgmr.msra.gmra.mrb[4].mxu0 %v229_v39 }
 0x20c   :  { %v346_v40 = vpop.f32.mrb[4].mxu1 }
 0x20d   :  { %v546_v41 = vpop.f32.mrb[5].mxu1 }
 0x20e   :  { %v349_v42 = vpop.f32.mrb[6].mxu1 }
 0x20f   :  { %v547_v43 = vpop.f32.mrb[7].mxu1 }
 0x210   :  { %v434_v44 = vpop.f32.mrb[4].mxu0 }
 0x211   :  { %v435_v46 = vadd.f32 %v434_v44, %v346_v40  ;;  %v566_v47 = vpop.f32.mrb[5].mxu0 }
 0x212   :  { %v437_v48 = vpop.f32.mrb[6].mxu0 }
 0x213   :  { %v447_v49 = vadd.f32 %v490_v45, %v435_v46  ;;  %v567_v50 = vpop.f32.mrb[7].mxu0 }
 0x215   :  { %v448_v51 = vpack.c.bf16 %v447_v49, %v447_v49 }
 0x217   :  { %449 = vst [vmem:[#allocation11] sm:$0xf] %v448_v51 }
 0x218   :  { %718 = shalt.err (!%p715_p2)
}
 0x219   :  { %s719_s8 = scalar_lea.hbm %s926_s9, 64 }
 0x21a   :  { %p720_p3 = scmp.ne.s32.totalorder %s926_s9, %s719_s8  ;;  %p723_p4 = scmp.lt.u32.totalorder %s719_s8, %s926_s9 }
 0x21c   :  { %p725_p5 = pnand %p723_p4, %p720_p3 }
 0x21e   :  { %728 = shalt.err (!%p725_p5)
}
 0x21f   :  { %459 = dma.vmem_to_hbm [thread:$0]  %s457_s29, 64, %s926_s9, [#allocation4]  }
 0x220   :  { %735 = dma.done.wait [#allocation4], 64  }
 0x221   :  { %736 = vsyncadd [#allocation4], 4294967232 }
 0x222   :  { %463 = vsyncpa [#allocation3], 1 }
 0x223   :  { %464 = vsyncpa [#allocation6], 1 }
 0x224   :  { %465 = vsyncpa [#allocation9], 1 }
 0x225   :  { %466 = vsyncpa [#allocation4], 1 }

</bundles_post_ra>
